<compile_context>
chip_gen: v6e
topology: v6e:2x2x1
jax: 0.10.0
libtpu: 0.0.40
codegen_flags: <defaults>
</compile_context>

<pallas_src>
import functools

import jax
import jax.numpy as jnp
from jax.experimental import pallas as pl
from jax.experimental.pallas import tpu as pltpu

_EPS = 1e-5   # nn.LayerNorm default eps
_LANE = 128   # TPU lane width


def _round_up(x, m):
    return ((x + m - 1) // m) * m


def _pad_last(a, target):
    pad = target - a.shape[-1]
    if pad == 0:
        return a
    cfg = [(0, 0)] * (a.ndim - 1) + [(0, pad)]
    return jnp.pad(a, cfg)


# ----------------------------- fused kernel ---------------------------------


def _masked_norm(h, mask, inv_d):
    """LayerNorm (no affine) over the true features of a lane-padded tile.

    h:     (tb, Dp) f32, padded lanes may hold anything
    mask:  (1, Dp)  f32, 1.0 on true lanes, 0.0 on padded lanes
    inv_d: 1 / true_feature_count
    Output has zeros on the padded lanes.
    """
    hm = h * mask
    mean = jnp.sum(hm, axis=-1, keepdims=True) * inv_d
    diff = (h - mean) * mask                        # zero on padded lanes
    var = jnp.sum(diff * diff, axis=-1, keepdims=True) * inv_d
    return diff * jax.lax.rsqrt(var + _EPS)


def _mlpbase_kernel(x_ref, w1_ref, bs_ref, wh_ref, gb_ref, o_ref,
                    *, obs_dim, hidden, layer_N, use_feature_norm):
    din_p = x_ref.shape[-1]
    h_p = o_ref.shape[-1]

    lane_in = jax.lax.broadcasted_iota(jnp.int32, (1, din_p), 1)
    lane_h = jax.lax.broadcasted_iota(jnp.int32, (1, h_p), 1)
    mask_in = (lane_in < obs_dim).astype(jnp.float32)
    mask_h = (lane_h < hidden).astype(jnp.float32)

    x = x_ref[...].astype(jnp.float32)

    # feature_norm: affine is folded into fc1's weight/bias, so only the
    # normalization itself happens here.
    if use_feature_norm:
        x = _masked_norm(x, mask_in, 1.0 / obs_dim)

    bs = bs_ref[...].astype(jnp.float32)            # (1+layer_N, h_p) biases
    gb = gb_ref[...].astype(jnp.float32)            # (2, h_p) final gamma/beta

    # fc1: Linear -> ReLU -> LayerNorm (affine folded forward unless last)
    h = jnp.dot(x, w1_ref[...], preferred_element_type=jnp.float32)
    h = jnp.maximum(h + bs[0:1], 0.0)
    h = _masked_norm(h, mask_h, 1.0 / hidden)
    if layer_N == 0:
        h = h * gb[0:1] + gb[1:2]

    # layer_N hidden layers: weights stacked, VMEM-resident, static unroll.
    for l in range(layer_N):
        h = jnp.dot(h, wh_ref[l], preferred_element_type=jnp.float32)
        h = jnp.maximum(h + bs[l + 1:l + 2], 0.0)
        h = _masked_norm(h, mask_h, 1.0 / hidden)
        if l == layer_N - 1:
            h = h * gb[0:1] + gb[1:2]               # final LayerNorm affine

    o_ref[...] = h.astype(o_ref.dtype)


# ----------------------------- wrapper --------------------------------------


def _fused_forward(xp, w1, bs, wh, gb, *, obs_dim, hidden, layer_N,
                   use_feature_norm, tile_b):
    Bp, din_p = xp.shape
    h_p = w1.shape[1]
    grid = (Bp // tile_b,)

    kernel = functools.partial(
        _mlpbase_kernel, obs_dim=obs_dim, hidden=hidden, layer_N=layer_N,
        use_feature_norm=use_feature_norm)

    return pl.pallas_call(
        kernel,
        out_shape=jax.ShapeDtypeStruct((Bp, h_p), xp.dtype),
        grid=grid,
        in_specs=[
            pl.BlockSpec((tile_b, din_p), lambda i: (i, 0)),            # x tile
            pl.BlockSpec((din_p, h_p), lambda i: (0, 0)),               # W1
            pl.BlockSpec((bs.shape[0], h_p), lambda i: (0, 0)),         # biases
            pl.BlockSpec((wh.shape[0], h_p, h_p), lambda i: (0, 0, 0)), # Wh
            pl.BlockSpec((2, h_p), lambda i: (0, 0)),                   # final g,b
        ],
        out_specs=pl.BlockSpec((tile_b, h_p), lambda i: (i, 0)),
        compiler_params=pltpu.CompilerParams(
            dimension_semantics=("parallel",)),
    )(xp, w1, bs, wh, gb)


@functools.partial(jax.jit, static_argnames=(
    "obs_dim", "hidden", "layer_N", "use_feature_norm"))
def mlpbase_forward(params, x, *, obs_dim, hidden, layer_N,
                    use_feature_norm=True):
    """Full MLPBase forward. x: (B, obs_dim) -> (B, hidden)."""
    f32 = jnp.float32
    din_p = _round_up(obs_dim, _LANE)
    h_p = _round_up(hidden, _LANE)

    # ---- fold each LayerNorm affine into the NEXT Linear (exact identity) ----
    w1 = params["fc1"]["w"].astype(f32)
    b1 = params["fc1"]["b"].astype(f32)
    if use_feature_norm:
        fn = params["feature_norm"]
        b1 = fn["beta"].astype(f32) @ w1 + b1
        w1 = fn["gamma"].astype(f32)[:, None] * w1

    g_prev = params["fc1"]["gamma"].astype(f32)
    bt_prev = params["fc1"]["beta"].astype(f32)
    ws_h, bs_h = [], []
    for pp in params["fc_h"]:
        w = pp["w"].astype(f32)
        b = bt_prev @ w + pp["b"].astype(f32)
        w = g_prev[:, None] * w
        ws_h.append(w)
        bs_h.append(b)
        g_prev = pp["gamma"].astype(f32)
        bt_prev = pp["beta"].astype(f32)

    # ---- lane-pad / stack parameters (zero padding keeps the math exact) ----
    w1p = jnp.zeros((din_p, h_p), f32).at[:obs_dim, :hidden].set(w1)

    n_stack = max(layer_N, 1)   # keep a non-empty input even for layer_N == 0
    whp = jnp.zeros((n_stack, h_p, h_p), f32)
    for l, w in enumerate(ws_h):
        whp = whp.at[l, :hidden, :hidden].set(w)

    bias_stack = jnp.zeros((1 + layer_N, h_p), f32)
    bias_stack = bias_stack.at[0, :hidden].set(b1)
    for l, b in enumerate(bs_h):
        bias_stack = bias_stack.at[1 + l, :hidden].set(b)

    gb = jnp.zeros((2, h_p), f32)
    gb = gb.at[0, :hidden].set(g_prev).at[1, :hidden].set(bt_prev)

    # ---- pad the batch / pick a batch tile ----
    B = x.shape[0]
    tile_b = min(_round_up(B, 8), 256)
    Bp = _round_up(B, tile_b)
    xp = _pad_last(x.astype(f32), din_p)
    if Bp != B:
        xp = jnp.pad(xp, ((0, Bp - B), (0, 0)))

    out = _fused_forward(xp, w1p, bias_stack, whp, gb,
                         obs_dim=obs_dim, hidden=hidden, layer_N=layer_N,
                         use_feature_norm=use_feature_norm, tile_b=tile_b)
    return out[:B, :hidden].astype(x.dtype)


# ----------------------------- parameters -----------------------------------


def _orthogonal(key, in_dim, out_dim, gain, dtype=jnp.float32):
    """Orthogonal init (PyTorch stores (out, in); we return (in, out))."""
    init = jax.nn.initializers.orthogonal(scale=gain)
    w_out_in = init(key, (out_dim, in_dim), dtype)  # like nn.Linear.weight
    return w_out_in.T                               # (in, out) for y = x @ W + b


def make_mlpbase_params(key, obs_dim, hidden_size, layer_N,
                        use_feature_normalization=True, dtype=jnp.float32):
    gain = jnp.sqrt(2.0)  # nn.init.calculate_gain('relu') for activation_id=1
    keys = jax.random.split(key, 2)
    params = {}
    if use_feature_normalization:
        params["feature_norm"] = dict(gamma=jnp.ones((obs_dim,), dtype),
                                      beta=jnp.zeros((obs_dim,), dtype))
    params["fc1"] = dict(
        w=_orthogonal(keys[0], obs_dim, hidden_size, gain, dtype),
        b=jnp.zeros((hidden_size,), dtype),
        gamma=jnp.ones((hidden_size,), dtype),
        beta=jnp.zeros((hidden_size,), dtype),
    )
    # get_clones deep-copies fc_h, so all layer_N layers share the SAME init.
    wh = _orthogonal(keys[1], hidden_size, hidden_size, gain, dtype)
    params["fc_h"] = [
        dict(w=wh, b=jnp.zeros((hidden_size,), dtype),
             gamma=jnp.ones((hidden_size,), dtype),
             beta=jnp.zeros((hidden_size,), dtype))
        for _ in range(layer_N)
    ]
    return params


# ----------------------------- pure-JAX reference ----------------------------


def _ref_forward(params, x, use_feature_norm=True):
    def ln(h, g, b):
        mean = jnp.mean(h, axis=-1, keepdims=True)
        var = jnp.mean((h - mean) ** 2, axis=-1, keepdims=True)
        return (h - mean) * jax.lax.rsqrt(var + _EPS) * g + b

    if use_feature_norm:
        fn = params["feature_norm"]
        x = ln(x, fn["gamma"], fn["beta"])
    p = params["fc1"]
    x = ln(jnp.maximum(x @ p["w"] + p["b"], 0.0), p["gamma"], p["beta"])
    for p in params["fc_h"]:
        x = ln(jnp.maximum(x @ p["w"] + p["b"], 0.0), p["gamma"], p["beta"])
    return x


# ----------------------------- main ------------------------------------------

if __name__ == "__main__":
    # args: use_feature_normalization=True, use_orthogonal=True,
    #       activation_id=1 (ReLU), use_conv1d=False, stacked_frames=1,
    #       layer_N=1, hidden_size=32 ; obs_shape=(48,)
    batch = 8
    obs_dim = 48
    hidden_size = 32
    layer_N = 1

    key = jax.random.PRNGKey(0)
    k_params, k_x = jax.random.split(key)

    params = make_mlpbase_params(k_params, obs_dim, hidden_size, layer_N)
    x = jax.random.normal(k_x, (batch, obs_dim), jnp.float32)

    out = mlpbase_forward(params, x, obs_dim=obs_dim, hidden=hidden_size,
                          layer_N=layer_N, use_feature_norm=True)
    out = jax.block_until_ready(out)
    assert out.shape == (batch, hidden_size), out.shape

    # Numerical check against a pure-JAX reference of the PyTorch module
    # (uses the ORIGINAL, un-folded parameters -> validates the affine fold).
    ref = jax.block_until_ready(_ref_forward(params, x))
    assert jnp.allclose(out, ref, rtol=1e-4, atol=1e-4), (
        float(jnp.max(jnp.abs(out - ref))))

    print("KERNEL_OK")
</pallas_src>

<mosaic_0001>
module attributes {stable_mosaic.version = 11 : i64} {
  func.func @_mlpbase_kernel(%arg0: i32, %arg1: memref<8x128xf32, #tpu.memory_space<vmem>>, %arg2: memref<128x128xf32, #tpu.memory_space<vmem>>, %arg3: memref<2x128xf32, #tpu.memory_space<vmem>>, %arg4: memref<1x128x128xf32, #tpu.memory_space<vmem>>, %arg5: memref<2x128xf32, #tpu.memory_space<vmem>>, %arg6: memref<8x128xf32, #tpu.memory_space<vmem>>) attributes {dimension_semantics = [#tpu.dimension_semantics<parallel>], iteration_bounds = array<i64: 1>, scalar_prefetch = 0 : i64, scratch_operands = 0 : i64, tpu.core_type = #tpu.core_type<tc>, window_params = [{transform_indices = @transform_0, window_bounds = array<i64: 8, 128>}, {pipeline_mode = #tpu.pipeline_mode<synchronous>, transform_indices = @transform_1, window_bounds = array<i64: 128, 128>}, {pipeline_mode = #tpu.pipeline_mode<synchronous>, transform_indices = @transform_2, window_bounds = array<i64: 2, 128>}, {pipeline_mode = #tpu.pipeline_mode<synchronous>, transform_indices = @transform_3, window_bounds = array<i64: 1, 128, 128>}, {pipeline_mode = #tpu.pipeline_mode<synchronous>, transform_indices = @transform_4, window_bounds = array<i64: 2, 128>}, {transform_indices = @transform_5, window_bounds = array<i64: 8, 128>}]} {
    %0 = tpu.iota {dimensions = array<i32: 1>} : vector<1x128xi32>
    %1 = tpu.iota {dimensions = array<i32: 1>} : vector<1x128xi32>
    %c48_i32 = arith.constant 48 : i32
    %2 = vector.broadcast %c48_i32 : i32 to vector<1x128xi32>
    %3 = arith.cmpi slt, %0, %2 : vector<1x128xi32>
    %4 = arith.extui %3 : vector<1x128xi1> to vector<1x128xi32>
    %5 = arith.sitofp %4 : vector<1x128xi32> to vector<1x128xf32>
    %c32_i32 = arith.constant 32 : i32
    %6 = vector.broadcast %c32_i32 : i32 to vector<1x128xi32>
    %7 = arith.cmpi slt, %1, %6 : vector<1x128xi32>
    %8 = arith.extui %7 : vector<1x128xi1> to vector<1x128xi32>
    %9 = arith.sitofp %8 : vector<1x128xi32> to vector<1x128xf32>
    %c0 = arith.constant 0 : index
    %c0_0 = arith.constant 0 : index
    %10 = vector.load %arg1[%c0, %c0_0] : memref<8x128xf32, #tpu.memory_space<vmem>>, vector<8x128xf32>
    %11 = vector.broadcast %5 : vector<1x128xf32> to vector<8x128xf32>
    %12 = arith.mulf %10, %11 : vector<8x128xf32>
    %cst = arith.constant dense<0.000000e+00> : vector<8xf32>
    %13 = vector.multi_reduction <add>, %12, %cst [1] : vector<8x128xf32> to vector<8xf32>
    %14 = vector.shape_cast %13 : vector<8xf32> to vector<8x1xf32>
    %cst_1 = arith.constant 0.020833334 : f32
    %15 = vector.broadcast %cst_1 : f32 to vector<8x1xf32>
    %16 = arith.mulf %14, %15 : vector<8x1xf32>
    %17 = vector.broadcast %16 : vector<8x1xf32> to vector<8x128xf32>
    %18 = arith.subf %10, %17 : vector<8x128xf32>
    %19 = vector.broadcast %5 : vector<1x128xf32> to vector<8x128xf32>
    %20 = arith.mulf %18, %19 : vector<8x128xf32>
    %21 = arith.mulf %20, %20 : vector<8x128xf32>
    %cst_2 = arith.constant dense<0.000000e+00> : vector<8xf32>
    %22 = vector.multi_reduction <add>, %21, %cst_2 [1] : vector<8x128xf32> to vector<8xf32>
    %23 = vector.shape_cast %22 : vector<8xf32> to vector<8x1xf32>
    %cst_3 = arith.constant 0.020833334 : f32
    %24 = vector.broadcast %cst_3 : f32 to vector<8x1xf32>
    %25 = arith.mulf %23, %24 : vector<8x1xf32>
    %cst_4 = arith.constant 9.99999974E-6 : f32
    %26 = vector.broadcast %cst_4 : f32 to vector<8x1xf32>
    %27 = arith.addf %25, %26 : vector<8x1xf32>
    %28 = math.rsqrt %27 : vector<8x1xf32>
    %29 = vector.broadcast %28 : vector<8x1xf32> to vector<8x128xf32>
    %30 = arith.mulf %20, %29 : vector<8x128xf32>
    %c0_5 = arith.constant 0 : index
    %c0_6 = arith.constant 0 : index
    %31 = vector.load %arg3[%c0_5, %c0_6] : memref<2x128xf32, #tpu.memory_space<vmem>>, vector<2x128xf32>
    %c0_7 = arith.constant 0 : index
    %c0_8 = arith.constant 0 : index
    %32 = vector.load %arg5[%c0_7, %c0_8] : memref<2x128xf32, #tpu.memory_space<vmem>>, vector<2x128xf32>
    %c0_9 = arith.constant 0 : index
    %c0_10 = arith.constant 0 : index
    %33 = vector.load %arg2[%c0_9, %c0_10] : memref<128x128xf32, #tpu.memory_space<vmem>>, vector<128x128xf32>
    %cst_11 = arith.constant dense<0.000000e+00> : vector<8x128xf32>
    %34 = tpu.matmul %30, %33, %cst_11 {dimension_numbers = #tpu.dot_dimension_numbers<[1], [0], [0], [1], [0, 0, 1, 1], [], []>} : vector<8x128xf32>, vector<128x128xf32>, vector<8x128xf32> -> vector<8x128xf32>
    %35 = vector.extract_strided_slice %31 {offsets = [0, 0], sizes = [1, 128], strides = [1, 1]} : vector<2x128xf32> to vector<1x128xf32>
    %36 = vector.broadcast %35 : vector<1x128xf32> to vector<8x128xf32>
    %37 = arith.addf %34, %36 : vector<8x128xf32>
    %cst_12 = arith.constant 0.000000e+00 : f32
    %38 = vector.broadcast %cst_12 : f32 to vector<8x128xf32>
    %39 = arith.maximumf %37, %38 : vector<8x128xf32>
    %40 = vector.broadcast %9 : vector<1x128xf32> to vector<8x128xf32>
    %41 = arith.mulf %39, %40 : vector<8x128xf32>
    %cst_13 = arith.constant dense<0.000000e+00> : vector<8xf32>
    %42 = vector.multi_reduction <add>, %41, %cst_13 [1] : vector<8x128xf32> to vector<8xf32>
    %43 = vector.shape_cast %42 : vector<8xf32> to vector<8x1xf32>
    %cst_14 = arith.constant 3.125000e-02 : f32
    %44 = vector.broadcast %cst_14 : f32 to vector<8x1xf32>
    %45 = arith.mulf %43, %44 : vector<8x1xf32>
    %46 = vector.broadcast %45 : vector<8x1xf32> to vector<8x128xf32>
    %47 = arith.subf %39, %46 : vector<8x128xf32>
    %48 = vector.broadcast %9 : vector<1x128xf32> to vector<8x128xf32>
    %49 = arith.mulf %47, %48 : vector<8x128xf32>
    %50 = arith.mulf %49, %49 : vector<8x128xf32>
    %cst_15 = arith.constant dense<0.000000e+00> : vector<8xf32>
    %51 = vector.multi_reduction <add>, %50, %cst_15 [1] : vector<8x128xf32> to vector<8xf32>
    %52 = vector.shape_cast %51 : vector<8xf32> to vector<8x1xf32>
    %cst_16 = arith.constant 3.125000e-02 : f32
    %53 = vector.broadcast %cst_16 : f32 to vector<8x1xf32>
    %54 = arith.mulf %52, %53 : vector<8x1xf32>
    %cst_17 = arith.constant 9.99999974E-6 : f32
    %55 = vector.broadcast %cst_17 : f32 to vector<8x1xf32>
    %56 = arith.addf %54, %55 : vector<8x1xf32>
    %57 = math.rsqrt %56 : vector<8x1xf32>
    %58 = vector.broadcast %57 : vector<8x1xf32> to vector<8x128xf32>
    %59 = arith.mulf %49, %58 : vector<8x128xf32>
    %c0_18 = arith.constant 0 : index
    %c0_19 = arith.constant 0 : index
    %c0_20 = arith.constant 0 : index
    %60 = vector.load %arg4[%c0_18, %c0_19, %c0_20] : memref<1x128x128xf32, #tpu.memory_space<vmem>>, vector<1x128x128xf32>
    %61 = vector.shape_cast %60 : vector<1x128x128xf32> to vector<128x128xf32>
    %cst_21 = arith.constant dense<0.000000e+00> : vector<8x128xf32>
    %62 = tpu.matmul %59, %61, %cst_21 {dimension_numbers = #tpu.dot_dimension_numbers<[1], [0], [0], [1], [0, 0, 1, 1], [], []>} : vector<8x128xf32>, vector<128x128xf32>, vector<8x128xf32> -> vector<8x128xf32>
    %63 = vector.extract_strided_slice %31 {offsets = [1, 0], sizes = [1, 128], strides = [1, 1]} : vector<2x128xf32> to vector<1x128xf32>
    %64 = vector.broadcast %63 : vector<1x128xf32> to vector<8x128xf32>
    %65 = arith.addf %62, %64 : vector<8x128xf32>
    %cst_22 = arith.constant 0.000000e+00 : f32
    %66 = vector.broadcast %cst_22 : f32 to vector<8x128xf32>
    %67 = arith.maximumf %65, %66 : vector<8x128xf32>
    %68 = vector.broadcast %9 : vector<1x128xf32> to vector<8x128xf32>
    %69 = arith.mulf %67, %68 : vector<8x128xf32>
    %cst_23 = arith.constant dense<0.000000e+00> : vector<8xf32>
    %70 = vector.multi_reduction <add>, %69, %cst_23 [1] : vector<8x128xf32> to vector<8xf32>
    %71 = vector.shape_cast %70 : vector<8xf32> to vector<8x1xf32>
    %cst_24 = arith.constant 3.125000e-02 : f32
    %72 = vector.broadcast %cst_24 : f32 to vector<8x1xf32>
    %73 = arith.mulf %71, %72 : vector<8x1xf32>
    %74 = vector.broadcast %73 : vector<8x1xf32> to vector<8x128xf32>
    %75 = arith.subf %67, %74 : vector<8x128xf32>
    %76 = vector.broadcast %9 : vector<1x128xf32> to vector<8x128xf32>
    %77 = arith.mulf %75, %76 : vector<8x128xf32>
    %78 = arith.mulf %77, %77 : vector<8x128xf32>
    %cst_25 = arith.constant dense<0.000000e+00> : vector<8xf32>
    %79 = vector.multi_reduction <add>, %78, %cst_25 [1] : vector<8x128xf32> to vector<8xf32>
    %80 = vector.shape_cast %79 : vector<8xf32> to vector<8x1xf32>
    %cst_26 = arith.constant 3.125000e-02 : f32
    %81 = vector.broadcast %cst_26 : f32 to vector<8x1xf32>
    %82 = arith.mulf %80, %81 : vector<8x1xf32>
    %cst_27 = arith.constant 9.99999974E-6 : f32
    %83 = vector.broadcast %cst_27 : f32 to vector<8x1xf32>
    %84 = arith.addf %82, %83 : vector<8x1xf32>
    %85 = math.rsqrt %84 : vector<8x1xf32>
    %86 = vector.broadcast %85 : vector<8x1xf32> to vector<8x128xf32>
    %87 = arith.mulf %77, %86 : vector<8x128xf32>
    %88 = vector.extract_strided_slice %32 {offsets = [0, 0], sizes = [1, 128], strides = [1, 1]} : vector<2x128xf32> to vector<1x128xf32>
    %89 = vector.broadcast %88 : vector<1x128xf32> to vector<8x128xf32>
    %90 = arith.mulf %87, %89 : vector<8x128xf32>
    %91 = vector.extract_strided_slice %32 {offsets = [1, 0], sizes = [1, 128], strides = [1, 1]} : vector<2x128xf32> to vector<1x128xf32>
    %92 = vector.broadcast %91 : vector<1x128xf32> to vector<8x128xf32>
    %93 = arith.addf %90, %92 : vector<8x128xf32>
    %c0_28 = arith.constant 0 : index
    %c0_29 = arith.constant 0 : index
    %94 = vector.load %arg6[%c0_28, %c0_29] : memref<8x128xf32, #tpu.memory_space<vmem>>, vector<8x128xf32>
    tpu.vector_store %arg6[%c0_28, %c0_29], %93 {strides = array<i32>} : memref<8x128xf32, #tpu.memory_space<vmem>>, vector<8x128xf32>,
    return
  }
  func.func @transform_0(%arg0: i32) -> (i32, i32) {
    %c0_i32 = arith.constant 0 : i32
    %c0_i32_0 = arith.constant 0 : i32
    return %arg0, %c0_i32 : i32, i32
  }
  func.func @transform_1(%arg0: i32) -> (i32, i32) {
    %c0_i32 = arith.constant 0 : i32
    %c0_i32_0 = arith.constant 0 : i32
    %c0_i32_1 = arith.constant 0 : i32
    return %c0_i32, %c0_i32_0 : i32, i32
  }
  func.func @transform_2(%arg0: i32) -> (i32, i32) {
    %c0_i32 = arith.constant 0 : i32
    %c0_i32_0 = arith.constant 0 : i32
    %c0_i32_1 = arith.constant 0 : i32
    return %c0_i32, %c0_i32_0 : i32, i32
  }
  func.func @transform_3(%arg0: i32) -> (i32, i32, i32) {
    %c0_i32 = arith.constant 0 : i32
    %c0_i32_0 = arith.constant 0 : i32
    %c0_i32_1 = arith.constant 0 : i32
    %c0_i32_2 = arith.constant 0 : i32
    return %c0_i32, %c0_i32_0, %c0_i32_1 : i32, i32, i32
  }
  func.func @transform_4(%arg0: i32) -> (i32, i32) {
    %c0_i32 = arith.constant 0 : i32
    %c0_i32_0 = arith.constant 0 : i32
    %c0_i32_1 = arith.constant 0 : i32
    return %c0_i32, %c0_i32_0 : i32, i32
  }
  func.func @transform_5(%arg0: i32) -> (i32, i32) {
    %c0_i32 = arith.constant 0 : i32
    %c0_i32_0 = arith.constant 0 : i32
    return %arg0, %c0_i32 : i32, i32
  }
}

</mosaic_0001>

<bundles_post_ra>
// kernel: mlpbase_forward.1
= control target key start
LH: loop header
LB: loop body
LE: loop exit
PB: predicated region body
PF: predicated region fallthrough
CT: control target
= control target key end

     0   :  { %v21_v0 = vlaneseq  ;;  %s616_s0 = inlined_call_operand.vmem [shape: f32[8,128], index: 0, kind: input, shape index: {}]   ;;  %s617_s1 = inlined_call_operand.vmem [shape: f32[128,128], index: 1, kind: input, shape index: {}]   ;;  %s618_s2 = inlined_call_operand.vmem [shape: f32[2,128], index: 2, kind: input, shape index: {}]   ;;  %s619_s3 = inlined_call_operand.vmem [shape: f32[1,128,128], index: 3, kind: input, shape index: {}]   ;;  %s620_s4 = inlined_call_operand.vmem [shape: f32[2,128], index: 4, kind: input, shape index: {}]   ;;  %s621_s5 = inlined_call_operand.hbm [shape: f32[8,128], index: 5, kind: output, shape index: {}]  }
   0x1   :  { %10 = vsyncpa [#allocation3], 0  ;;  %v415_v1 = vmov 0.0   ;;  %v29_v3 = vld [vmem:[%s616_s0] sm:$0xff]  ;;  %v60_v6 = vld [vmem:[%s617_s1 + $0x78] sm:$0xff]  ;;  %vm416_vm1 = vmmov 0  }
   0x2   :  { %314 = vmatprep.subr.mxu0 %v415_v1  ;;  %349 = vmatprep.subr.mxu1 %v415_v1  ;;  %v451_v2 = vand.u32 127, %v21_v0  ;;  %v59_v7 = vld [vmem:[%s617_s1 + $0x70] sm:$0xff]  ;;  %v58_v8 = vld [vmem:[%s617_s1 + $0x68] sm:$0xff]  ;;  %v57_v9 = vld [vmem:[%s617_s1 + $0x60] sm:$0xff]  ;;  %v524_v32 = vshrl.u32 %v21_v0, 7  ;;  %s417_s30 = smov [#allocation2]  }
   0x3   :  { %315 = vmatpush3.msra.mxu0 %v60_v6  ;;  %v56_v10 = vld [vmem:[%s617_s1 + $0x58] sm:$0xff]  ;;  %v55_v11 = vld [vmem:[%s617_s1 + $0x50] sm:$0xff]  ;;  %v54_v17 = vld [vmem:[%s617_s1 + $0x48] sm:$0xff]  ;;  %346 = vmatprep.mubr.msk.f32.mxu0 %vm416_vm1, %v415_v1  ;;  %s270_s6 = sshll.u32 %s417_s30, 4  ;;  %s271_s6 = int_to_ptr.vmem [resolvable:$true] %s270_s6 }
   0x4   :  { %vm23_vm0 = vcmp.lt.s32.totalorder %v451_v2, 48  ;;  %316 = vmatprep.subr.mxu0 %v415_v1  ;;  %v53_v18 = vld [vmem:[%s617_s1 + $0x40] sm:$0xff]  ;;  %v52_v19 = vld [vmem:[%s617_s1 + $0x38] sm:$0xff]  ;;  %v51_v20 = vld [vmem:[%s617_s1 + $0x30] sm:$0xff]  ;;  %381 = vmatprep.mubr.msk.f32.mxu1 %vm416_vm1, %v415_v1  ;;  %v63_v33 = vsub.s32 0, %v524_v32  ;;  %vm26_vm2 = vcmp.lt.s32.totalorder %v451_v2, 32  ;;  %p398_p1 = scmp.lt.s32.totalorder %s271_s6, %s271_s6 }
   0x5   :  { %v278_v4 = vsel %vm23_vm0, 1.0, %v415_v1  ;;  %317 = vmatpush3.msra.mxu0 %v59_v7  ;;  %v50_v21 = vld [vmem:[%s617_s1 + $0x28] sm:$0xff]  ;;  %v49_v22 = vld [vmem:[%s617_s1 + $0x20] sm:$0xff]  ;;  %v48_v23 = vld [vmem:[%s617_s1 + $0x18] sm:$0xff]  ;;  %v537_v39 = vsel %vm26_vm2, 1.0, %v415_v1  ;;  %s393_s7 = scalar_lea.vmem %s271_s6, 128 }
   0x6   :  { %v30_v5 = vmul.f32 %v278_v4, %v29_v3  ;;  %318 = vmatprep.subr.mxu0 %v415_v1  ;;  %v47_v24 = vld [vmem:[%s617_s1 + $0x10] sm:$0xff]  ;;  %v46_v25 = vld [vmem:[%s617_s1 + $0x8] sm:$0xff]  ;;  %v45_v26 = vld [vmem:[%s617_s1] sm:$0xff]  ;;  %p394_p0 = scmp.ne.s32.totalorder %s271_s6, %s393_s7  ;;  %p399_p2 = scmp.lt.s32.totalorder %s393_s7, %s393_s7 }
   0x7   :  { %319 = vmatpush3.msra.mxu0 %v58_v8  ;;  %v530_v34 = vld [vmem:[%s618_s2] sm:$0x3]  ;;  %v164_v42 = vld [vmem:[%s619_s3 + $0x78] sm:$0xff]  ;;  %v163_v43 = vld [vmem:[%s619_s3 + $0x70] sm:$0xff] }
   0x8   :  { %31 = vadd.xlane.f32.xlu0 %v30_v5  ;;  %320 = vmatprep.subr.mxu0 %v415_v1  ;;  %v64_v35 = vrot.slane %v530_v34, %v63_v33  ;;  %v162_v44 = vld [vmem:[%s619_s3 + $0x68] sm:$0xff]  ;;  %v161_v45 = vld [vmem:[%s619_s3 + $0x60] sm:$0xff]  ;;  %v160_v46 = vld [vmem:[%s619_s3 + $0x58] sm:$0xff]  ;;  %v167_v5 = vsub.s32 1, %v524_v32  ;;  %p400_p3 = por %p399_p2, %p398_p1 }
   0x9   :  { %321 = vmatpush3.msra.mxu0 %v57_v9  ;;  %350 = vmatpush3.msra.mxu1 %v164_v42  ;;  %v159_v47 = vld [vmem:[%s619_s3 + $0x50] sm:$0xff]  ;;  %v158_v53 = vld [vmem:[%s619_s3 + $0x48] sm:$0xff]  ;;  %v157_v54 = vld [vmem:[%s619_s3 + $0x40] sm:$0xff] }
   0xa   :  { %322 = vmatprep.subr.mxu0 %v415_v1  ;;  %351 = vmatprep.subr.mxu1 %v415_v1  ;;  %v156_v55 = vld [vmem:[%s619_s3 + $0x38] sm:$0xff]  ;;  %v155_v56 = vld [vmem:[%s619_s3 + $0x30] sm:$0xff]  ;;  %v154_v57 = vld [vmem:[%s619_s3 + $0x28] sm:$0xff]  ;;  %v168_v6 = vrot.slane %v530_v34, %v167_v5  ;;  %p401_p4 = pnand %p400_p3, %p394_p0 }
   0xb   :  { %323 = vmatpush3.msra.mxu0 %v56_v10  ;;  %352 = vmatpush3.msra.mxu1 %v163_v43  ;;  %v153_v58 = vld [vmem:[%s619_s3 + $0x20] sm:$0xff]  ;;  %v152_v59 = vld [vmem:[%s619_s3 + $0x18] sm:$0xff]  ;;  %v151_v60 = vld [vmem:[%s619_s3 + $0x10] sm:$0xff] }
   0xc   :  { %324 = vmatprep.subr.mxu0 %v415_v1  ;;  %353 = vmatprep.subr.mxu1 %v415_v1  ;;  %v150_v61 = vld [vmem:[%s619_s3 + $0x8] sm:$0xff]  ;;  %v149_v62 = vld [vmem:[%s619_s3] sm:$0xff] }
   0xd   :  { %325 = vmatpush3.msra.mxu0 %v55_v11  ;;  %354 = vmatpush3.msra.mxu1 %v162_v44 }
   0xe   :  { %326 = vmatprep.subr.mxu0 %v415_v1  ;;  %355 = vmatprep.subr.mxu1 %v415_v1 }
   0xf   :  { %327 = vmatpush3.msra.mxu0 %v54_v17  ;;  %356 = vmatpush3.msra.mxu1 %v161_v45 }
  0x10   :  { %328 = vmatprep.subr.mxu0 %v415_v1  ;;  %357 = vmatprep.subr.mxu1 %v415_v1 }
  0x11   :  { %329 = vmatpush3.msra.mxu0 %v53_v18  ;;  %358 = vmatpush3.msra.mxu1 %v160_v46 }
  0x12   :  { %330 = vmatprep.subr.mxu0 %v415_v1  ;;  %359 = vmatprep.subr.mxu1 %v415_v1 }
  0x13   :  { %331 = vmatpush3.msra.mxu0 %v52_v19  ;;  %360 = vmatpush3.msra.mxu1 %v159_v47  ;;  %v44_v19 = vld [vmem:[%s620_s4] sm:$0x3] }
  0x14   :  { %332 = vmatprep.subr.mxu0 %v415_v1  ;;  %361 = vmatprep.subr.mxu1 %v415_v1 }
  0x15   :  { %333 = vmatpush3.msra.mxu0 %v51_v20  ;;  %362 = vmatpush3.msra.mxu1 %v158_v53  ;;  %v256_v20 = vrot.slane %v44_v19, %v63_v33 }
  0x16   :  { %334 = vmatprep.subr.mxu0 %v415_v1  ;;  %363 = vmatprep.subr.mxu1 %v415_v1 }
  0x17   :  { %335 = vmatpush3.msra.mxu0 %v50_v21  ;;  %364 = vmatpush3.msra.mxu1 %v157_v54 }
  0x18   :  { %336 = vmatprep.subr.mxu0 %v415_v1  ;;  %365 = vmatprep.subr.mxu1 %v415_v1 }
  0x19   :  { %337 = vmatpush3.msra.mxu0 %v49_v22  ;;  %366 = vmatpush3.msra.mxu1 %v156_v55 }
  0x1a   :  { %338 = vmatprep.subr.mxu0 %v415_v1  ;;  %367 = vmatprep.subr.mxu1 %v415_v1 }
  0x1b   :  { %339 = vmatpush3.msra.mxu0 %v48_v23  ;;  %368 = vmatpush3.msra.mxu1 %v155_v56  ;;  %v261_v23 = vrot.slane %v44_v19, %v167_v5 }
  0x1c   :  { %340 = vmatprep.subr.mxu0 %v415_v1  ;;  %369 = vmatprep.subr.mxu1 %v415_v1 }
  0x1d   :  { %341 = vmatpush3.msra.mxu0 %v47_v24  ;;  %370 = vmatpush3.msra.mxu1 %v154_v57 }
  0x1e   :  { %342 = vmatprep.subr.mxu0 %v415_v1  ;;  %371 = vmatprep.subr.mxu1 %v415_v1 }
  0x1f   :  { %343 = vmatpush3.msra.mxu0 %v46_v25  ;;  %372 = vmatpush3.msra.mxu1 %v153_v58 }
  0x20   :  { %344 = vmatprep.subr.mxu0 %v415_v1  ;;  %373 = vmatprep.subr.mxu1 %v415_v1 }
  0x21   :  { %345 = vmatpush3.msra.mxu0 %v45_v26  ;;  %374 = vmatpush3.msra.mxu1 %v152_v59 }
  0x22   :  { %375 = vmatprep.subr.mxu1 %v415_v1 }
  0x23   :  { %376 = vmatpush3.msra.mxu1 %v151_v60 }
  0x24   :  { %377 = vmatprep.subr.mxu1 %v415_v1 }
  0x25   :  { %378 = vmatpush3.msra.mxu1 %v150_v61 }
  0x26   :  { %379 = vmatprep.subr.mxu1 %v415_v1 }
  0x27   :  { %380 = vmatpush3.msra.mxu1 %v149_v62 }
  0x91   :  { %v32_v12 = vpop.xlane.xlu0 %31 }
  0x92   :  { %v33_v13 = vmul.f32 0.020833334, %v32_v12 }
  0x94   :  { %v34_v14 = vsub.f32 %v29_v3, %v33_v13 }
  0x96   :  { %v35_v15 = vmul.f32 %v278_v4, %v34_v14 }
  0x98   :  { %v36_v16 = vmul.f32 %v35_v15, %v35_v15 }
  0x9a   :  { %37 = vadd.xlane.f32.xlu0 %v36_v16 }
 0x123   :  { %v38_v27 = vpop.xlane.xlu0 %37 }
 0x124   :  { %v39_v28 = vmul.f32 0.020833334, %v38_v27 }
 0x126   :  { %v40_v29 = vadd.f32 1e-05, %v39_v28 }
 0x128   :  { %387 = vrsqrt.f32 %v40_v29 }
 0x135   :  { %v388_v30 = vpop.eup %387 }
 0x136   :  { %v42_v31 = vmul.f32 %v388_v30, %v35_v15 }
 0x138   :  { %347 = vmatmul.mubr.f32.vlgmr.msra.gmra.mxu0 %v42_v31 }
 0x1f8   :  { %v131_v36 = vpop.f32.mrf.mxu0 }
 0x1f9   :  { %v132_v37 = vadd.f32 %v131_v36, %v64_v35 }
 0x1fa   :  { %v348_v38 = vpop.f32.mrf.mxu0 }
 0x1fb   :  { %v135_v40 = vmax.f32 %v132_v37, 0.0 }
 0x1fd   :  { %v136_v41 = vmul.f32 %v537_v39, %v135_v40 }
 0x1ff   :  { %137 = vadd.xlane.f32.xlu1 %v136_v41 }
 0x288   :  { %v138_v48 = vpop.xlane.xlu1 %137 }
 0x289   :  { %v139_v49 = vmul.f32 0.03125, %v138_v48 }
 0x28b   :  { %v140_v50 = vsub.f32 %v135_v40, %v139_v49 }
 0x28d   :  { %v141_v51 = vmul.f32 %v537_v39, %v140_v50 }
 0x28f   :  { %v142_v52 = vmul.f32 %v141_v51, %v141_v51 }
 0x291   :  { %143 = vadd.xlane.f32.xlu1 %v142_v52 }
 0x31a   :  { %v144_v63 = vpop.xlane.xlu1 %143 }
 0x31b   :  { %v145_v0 = vmul.f32 0.03125, %v144_v63 }
 0x31d   :  { %v146_v2 = vadd.f32 1e-05, %v145_v0 }
 0x31f   :  { %389 = vrsqrt.f32 %v146_v2 }
 0x32c   :  { %v390_v3 = vpop.eup %389 }
 0x32d   :  { %v148_v4 = vmul.f32 %v390_v3, %v141_v51 }
 0x32f   :  { %382 = vmatmul.mubr.f32.vlgmr.msra.gmra.mxu1 %v148_v4 }
 0x3ef   :  { %v235_v7 = vpop.f32.mrf.mxu1 }
 0x3f0   :  { %v236_v8 = vadd.f32 %v235_v7, %v168_v6 }
 0x3f1   :  { %v383_v9 = vpop.f32.mrf.mxu1 }
 0x3f2   :  { %v239_v10 = vmax.f32 %v236_v8, 0.0 }
 0x3f4   :  { %v240_v11 = vmul.f32 %v537_v39, %v239_v10 }
 0x3f6   :  { %241 = vadd.xlane.f32.xlu0 %v240_v11 }
 0x47f   :  { %v242_v1 = vpop.xlane.xlu0 %241 }
 0x480   :  { %v243_v12 = vmul.f32 0.03125, %v242_v1 }
 0x482   :  { %v244_v13 = vsub.f32 %v239_v10, %v243_v12 }
 0x484   :  { %v245_v14 = vmul.f32 %v537_v39, %v244_v13 }
 0x486   :  { %v246_v15 = vmul.f32 %v245_v14, %v245_v14 }
 0x488   :  { %247 = vadd.xlane.f32.xlu1 %v246_v15 }
 0x511   :  { %v248_v16 = vpop.xlane.xlu1 %247 }
 0x512   :  { %v249_v17 = vmul.f32 0.03125, %v248_v16 }
 0x514   :  { %v250_v18 = vadd.f32 1e-05, %v249_v17 }
 0x516   :  { %391 = vrsqrt.f32 %v250_v18 }
 0x523   :  { %v392_v21 = vpop.eup %391 }
 0x524   :  { %v252_v22 = vmul.f32 %v392_v21, %v245_v14 }
 0x526   :  { %v257_v24 = vmul.f32 %v256_v20, %v252_v22 }
 0x528   :  { %v262_v25 = vadd.f32 %v261_v23, %v257_v24 }
 0x52a   :  { %263 = vst [vmem:[#allocation2] sm:$0xff] %v262_v25 }
 0x52b   :  { %404 = shalt.err (!%p401_p4)
}
 0x52c   :  { %273 = dma.vmem_to_hbm [thread:$0]  %s271_s6, 128, %s621_s5, [#allocation3]  }
 0x52d   :  { %413 = dma.done.wait [#allocation3], 128  }
 0x52e   :  { %414 = vsyncadd [#allocation3], 4294967168 }
 0x52f   :  { %277 = vsyncpa [#allocation3], 1 }

</bundles_post_ra>
